<compile_context>
chip_gen: v5e
topology: v5e:2x2
jax: 0.10.0
libtpu: 0.0.40
codegen_flags: <defaults>
</compile_context>

<pallas_src>
import jax
import jax.numpy as jnp
from jax.experimental import pallas as pl
from jax.experimental.pallas import tpu as pltpu


_LANE = 128
# Conservative budget for live pipeline buffers (2x input + 2x output double-buffered
# blocks). 12 MiB fits the default scoped-VMEM limit on every generation
# (16 MiB v5e, 32 MiB v6e/v7x) and leaves headroom under v7x's 64 MiB physical VMEM.
_VMEM_BUDGET_BYTES = 12 * 1024 * 1024


def _round_up(n, m):
    return ((n + m - 1) // m) * m


def _largest_divisor_le(n, limit):
    limit = max(1, min(n, limit))
    for d in range(limit, 0, -1):
        if n % d == 0:
            return d
    return 1


def _scale_rows_kernel(s_ref, x_ref, o_ref):
    # s_ref: (T, 1) float32 softmax scores; same block index every grid step so the
    #        runtime keeps it resident in VMEM (no re-DMA).
    # x_ref: (BB, T, TD) slab of the flattened input; o_ref: same shape/dtype as x.
    s = s_ref[...]                                            # (T, 1), f32
    o_ref[...] = (x_ref[...] * s[None, :, :]).astype(o_ref.dtype)


def temporal_attention(x, attn_weights):
    """Pallas TPU implementation of TemporalAttention.forward.

    x: (B, C, T, H, W); attn_weights: (T,) raw (pre-softmax) parameter.
    """
    B, C, T, H, W = x.shape
    assert attn_weights.shape == (T,), "num_frames must equal T (as in the torch module)"
    D = C * H * W
    itemsize = jnp.dtype(x.dtype).itemsize

    # Raw row-major reinterpretation, identical to torch's contiguous().view(B, T, C*H*W).
    x_flat = x.reshape(B, T, D)

    # Softmax hoisted out of the kernel (perf review): a (T,)-sized computation done once
    # here in float32 instead of once per grid step on-chip. Kept f32 even for bf16 x.
    scores = jax.nn.softmax(attn_weights.astype(jnp.float32)).reshape(T, 1)

    # --- lane-dense padding of D (output last dim must be a multiple of 128) ----------
    D_pad = _round_up(D, _LANE)
    if D_pad != D:
        # TODO(synk): padding copies the tensor once; a ragged-final-tile path would
        # avoid the extra HBM traffic for non-128-aligned C*H*W.
        x_flat = jnp.pad(x_flat, ((0, 0), (0, 0), (0, D_pad - D)))

    # --- tile selection ----------------------------------------------------------------
    per_block_budget = _VMEM_BUDGET_BYTES // 4        # in + out, each double-buffered
    # Largest 128-multiple D-tile whose (1, T, TD) block fits the per-block budget.
    td_budget = max(_LANE, (per_block_budget // (T * itemsize)) // _LANE * _LANE)
    TD = min(D_pad, td_budget)
    grid_d = pl.cdiv(D_pad, TD)
    # Re-balance so the last D tile is as full as possible (still 128-aligned).
    TD = min(D_pad, _round_up(pl.cdiv(D_pad, grid_d), _LANE))
    grid_d = pl.cdiv(D_pad, TD)

    if grid_d == 1:
        # Whole (T, D) frame-slab fits in one block: fold batch elements per step to
        # approach the block budget, but keep >= 2 grid steps when possible so both
        # v7x TensorCores are fed (both axes are marked "parallel").
        bb_budget = max(1, per_block_budget // (T * D_pad * itemsize))
        bb_cap = max(1, B // 2) if B >= 2 else 1
        BB = _largest_divisor_le(B, min(bb_budget, bb_cap))
    else:
        BB = 1
    grid_b = B // BB

    out_flat = pl.pallas_call(
        _scale_rows_kernel,
        out_shape=jax.ShapeDtypeStruct((B, T, D_pad), x.dtype),
        grid=(grid_b, grid_d),
        in_specs=[
            pl.BlockSpec((T, 1), lambda b, d: (0, 0)),          # scores (VMEM-resident)
            pl.BlockSpec((BB, T, TD), lambda b, d: (b, 0, d)),   # input slab
        ],
        out_specs=pl.BlockSpec((BB, T, TD), lambda b, d: (b, 0, d)),
        compiler_params=pltpu.CompilerParams(
            dimension_semantics=("parallel", "parallel"),
        ),
    )(scores, x_flat)

    if D_pad != D:
        out_flat = out_flat[:, :, :D]
    return out_flat.reshape(B, C, T, H, W)


def _reference(x, attn_weights):
    B, C, T, H, W = x.shape
    x_flat = x.reshape(B, T, C * H * W)
    scores = jax.nn.softmax(attn_weights.astype(jnp.float32)).astype(x.dtype)
    weighted = x_flat * scores[None, :, None]
    return weighted.reshape(B, C, T, H, W)


if __name__ == "__main__":
    key = jax.random.PRNGKey(0)

    # Case 1: lane-aligned D (C*H*W = 1024), num_frames == T = 8.
    B, C, T, H, W = 2, 4, 8, 16, 16
    kx, kw, key = jax.random.split(key, 3)
    x = jax.random.normal(kx, (B, C, T, H, W), dtype=jnp.float32)
    attn_weights = jax.random.normal(kw, (T,), dtype=jnp.float32)  # torch.randn(num_frames)

    out = jax.block_until_ready(temporal_attention(x, attn_weights))
    ref = _reference(x, attn_weights)
    assert out.shape == (B, C, T, H, W)
    assert jnp.allclose(out, ref, atol=1e-5, rtol=1e-5), "mismatch vs reference (aligned D)"

    # Case 2: non-128-aligned D (C*H*W = 4*15*15 = 900) exercises the padding path.
    B2, C2, T2, H2, W2 = 2, 4, 8, 15, 15
    kx2, kw2, key = jax.random.split(key, 3)
    x2 = jax.random.normal(kx2, (B2, C2, T2, H2, W2), dtype=jnp.float32)
    w2 = jax.random.normal(kw2, (T2,), dtype=jnp.float32)

    out2 = jax.block_until_ready(temporal_attention(x2, w2))
    ref2 = _reference(x2, w2)
    assert out2.shape == (B2, C2, T2, H2, W2)
    assert jnp.allclose(out2, ref2, atol=1e-5, rtol=1e-5), "mismatch vs reference (ragged D)"

    print("KERNEL_OK")
</pallas_src>

<mosaic_0001>
module attributes {stable_mosaic.version = 11 : i64} {
  func.func @_scale_rows_kernel(%arg0: i32, %arg1: i32, %arg2: memref<8x1xf32, #tpu.memory_space<vmem>>, %arg3: memref<1x8x1024xf32, #tpu.memory_space<vmem>>, %arg4: memref<1x8x1024xf32, #tpu.memory_space<vmem>>) attributes {dimension_semantics = [#tpu.dimension_semantics<parallel>, #tpu.dimension_semantics<parallel>], iteration_bounds = array<i64: 2, 1>, scalar_prefetch = 0 : i64, scratch_operands = 0 : i64, tpu.core_type = #tpu.core_type<tc>, window_params = [{pipeline_mode = #tpu.pipeline_mode<synchronous>, transform_indices = @transform_0, window_bounds = array<i64: 8, 1>}, {transform_indices = @transform_1, window_bounds = array<i64: 1, 8, 1024>}, {transform_indices = @transform_2, window_bounds = array<i64: 1, 8, 1024>}]} {
    %c0 = arith.constant 0 : index
    %c0_0 = arith.constant 0 : index
    %0 = vector.load %arg2[%c0, %c0_0] : memref<8x1xf32, #tpu.memory_space<vmem>>, vector<8x1xf32>
    %c0_1 = arith.constant 0 : index
    %c0_2 = arith.constant 0 : index
    %c0_3 = arith.constant 0 : index
    %1 = vector.load %arg3[%c0_1, %c0_2, %c0_3] : memref<1x8x1024xf32, #tpu.memory_space<vmem>>, vector<1x8x1024xf32>
    %2 = vector.shape_cast %0 : vector<8x1xf32> to vector<1x8x1xf32>
    %3 = vector.broadcast %2 : vector<1x8x1xf32> to vector<1x8x1024xf32>
    %4 = arith.mulf %1, %3 : vector<1x8x1024xf32>
    %c0_4 = arith.constant 0 : index
    %c0_5 = arith.constant 0 : index
    %c0_6 = arith.constant 0 : index
    %5 = vector.load %arg4[%c0_4, %c0_5, %c0_6] : memref<1x8x1024xf32, #tpu.memory_space<vmem>>, vector<1x8x1024xf32>
    tpu.vector_store %arg4[%c0_4, %c0_5, %c0_6], %4 {strides = array<i32>} : memref<1x8x1024xf32, #tpu.memory_space<vmem>>, vector<1x8x1024xf32>,
    return
  }
  func.func @transform_0(%arg0: i32, %arg1: i32) -> (i32, i32) {
    %c0_i32 = arith.constant 0 : i32
    %c0_i32_0 = arith.constant 0 : i32
    %c0_i32_1 = arith.constant 0 : i32
    return %c0_i32, %c0_i32_0 : i32, i32
  }
  func.func @transform_1(%arg0: i32, %arg1: i32) -> (i32, i32, i32) {
    %c0_i32 = arith.constant 0 : i32
    %c0_i32_0 = arith.constant 0 : i32
    return %arg0, %c0_i32, %arg1 : i32, i32, i32
  }
  func.func @transform_2(%arg0: i32, %arg1: i32) -> (i32, i32, i32) {
    %c0_i32 = arith.constant 0 : i32
    %c0_i32_0 = arith.constant 0 : i32
    return %arg0, %c0_i32, %arg1 : i32, i32, i32
  }
}

</mosaic_0001>

<bundles_post_ra>
// kernel: tpu_custom_call.1
= control target key start
LH: loop header
LB: loop body
LE: loop exit
PB: predicated region body
PF: predicated region fallthrough
CT: control target
= control target key end

     0   :  { %7 = vsyncpa [#allocation3], 0  ;;  %s649_s0 = inlined_call_operand.vmem [shape: f32[8,1], index: 0, kind: input, shape index: {}]   ;;  %s650_s1 = inlined_call_operand.hbm [shape: f32[2,8,1024], index: 1, kind: input, shape index: {}]   ;;  %s651_s2 = inlined_call_operand.hbm [shape: f32[2,8,1024], index: 2, kind: output, shape index: {}]  }
   0x1   :  { %9 = vsyncpa [#allocation3 + $0x1], 0 }
   0x2   :  { %10 = vsyncpa [#allocation4], 0 }
   0x3   :  { %12 = vsyncpa [#allocation4 + $0x1], 0  ;;  %s526_s9 = smov 0   ;;  %s528_s10 = smov 0  }
   0x4   :  { %s530_s11 = smov 0   ;;  %s532_s12 = smov 0  }
   0x5   :  { %s534_s13 = smov 0   ;;  %s536_s14 = smov 0  }
   0x6 LB: > { %s315_s15 = sadd.s32 4294967295, %s508_s14   ;;  %s316_s16 = sadd.s32 4294967294, %s508_s14   ;;  %s508_s14 = sphi %s536_s14, %s18_s14   ;;  %s504_s13 = sphi %s534_s13, %s660_s13   ;;  %s500_s12 = sphi %s532_s12, %s659_s12   ;;  %s496_s11 = sphi %s530_s11, %s658_s11   ;;  %s492_s10 = sphi %s528_s10, %s657_s10   ;;  %s488_s9 = sphi %s526_s9, %s656_s9  }
   0x7   : > { %s30_s17 = sadd.s32 1, %s504_s13  ;;  %s60_s18 = sadd.s32 1, %s496_s11 }
   0x8   : > { %p32_p0 = scmp.ge.s32.totalorder %s30_s17, 2  ;;  %p67_p1 = scmp.ne.s32.totalorder %s496_s11, %s492_s10 }
   0x9   : > { %p68_p2 = scmp.eq.s32.totalorder %s508_s14, 0  ;;  %p73_p3 = scmp.ne.s32.totalorder %s492_s10, %s488_s9 }
   0xa   : > { %s662_s17 = smov (%p32_p0, %s30_s17), 0  ;;  %p74_p5 = scmp.eq.s32.totalorder %s315_s15, 0 }
   0xb   : > { %p567_p4 = por %p68_p2, %p67_p1  ;;  %s55_s20 = ssub.s32 %s504_s13, %s662_s17 }
   0xc   : > { %p99_p6 = scmp.eq.s32.totalorder %s315_s15, 1  ;;  %p58_p7 = scmp.eq.s32.totalorder %s55_s20, 0 }
   0xd   : > { %p573_p8 = por %p74_p5, %p73_p3  ;;  %p105_p10 = scmp.eq.s32.totalorder %s316_s16, 1 }
   0xe   : > { %p577_p9 = por %p99_p6, %p67_p1  ;;  %p318_p12 = scmp.ge.s32.totalorder %s508_s14, 2 }
   0xf   : > { %s582_s23 = scalar_select %p58_p7, %s496_s11, %s60_s18  }
  0x10   : > { %p584_p11 = por %p105_p10, %p73_p3  ;;  %p344_p13 = scmp.lt.s32.totalorder %s508_s14, 2 }
  0x11   : > { %s128_s25 = sand.u32 1, %s496_s11   ;;  %s330_s27 = sshll.u32 %s504_s13, 6 }
  0x12   : > { %s319_s26 = sshll.u32 %s128_s25, 6  ;;  %s139_s30 = scalar_lea.hbm %s650_s1, %s330_s27 }
  0x13   : > { %s132_s3 = scalar_lea.vmem [#allocation2], %s319_s26  ;;  %s141_s5 = sshll.u32 %s139_s30, 4  ;;  %s142_s5 = int_to_ptr.hbm [resolvable:$true] %s141_s5 }
  0x14   : > { %s143_s4 = sshll.u32 %s132_s3, 4  ;;  %p337_p0 = pnand %p344_p13, %p567_p4  ;;  %s144_s4 = int_to_ptr.vmem [resolvable:$true] %s143_s4 }
  0x15   : > { %p322_p1 = scmp.ge.s32.totalorder %s508_s14, 1  ;;  %p148_p2 = scmp.lt.s32.totalorder %s508_s14, 3 }
  0x16   : > { %s129_s6 = scalar_lea.sflag [#allocation3], %s128_s25 }
  0x17   : > { %339 = dma.hbm_to_vmem [thread:$0]  (!%p337_p0), %s142_s5, 1024, %s144_s4, %s129_s6  }
  0x18   : > { %p149_p3 = pnand %p322_p1, %p148_p2 }
  0x19   : > { %s600_s7 = sand.u32 (!%p149_p3), 1, %s492_s10  }
  0x1a   : > { %152 = sbr.rel (%p149_p3) target bundleno = 161 (0xa1), region = 28  ;;  %s323_s8 = sshll.u32 (!%p149_p3), %s600_s7, 6 }
  0x1b   : > { %s155_s15 = scalar_lea.sflag (!%p149_p3), [#allocation3], %s600_s7  ;;  %s158_s16 = scalar_lea.vmem (!%p149_p3), [#allocation2], %s323_s8 }
  0x1f   : > { %479 = dma.done.wait (%p573_p8), %s155_s15, 1024  }
  0x20   : > { %481 = vsyncadd (%p573_p8), %s155_s15, 4294966272  ;;  %v510_v0 = vmov 0   ;;  %v182_v1 = vld [vmem:[%s649_s0] sm:$0xff]  ;;  %v184_v3 = vld [vmem:[%s158_s16 + $0x8] sm:$0xff]  ;;  %s331_s20 = sshll.u32 %s500_s12, 6  ;;  %s179_s27 = scalar_lea.vmem [#allocation5], %s323_s8 }
  0x21   : > { %395 = vset.pattern.permute.xlu0 %v510_v0  ;;  %v183_v2 = vld [vmem:[%s158_s16] sm:$0xff]  ;;  %v185_v4 = vld [vmem:[%s158_s16 + $0x10] sm:$0xff]  ;;  %v186_v5 = vld [vmem:[%s158_s16 + $0x18] sm:$0xff]  ;;  %s226_s26 = scalar_lea.hbm %s651_s2, %s331_s20  ;;  %s228_s12 = sshll.u32 %s179_s27, 4  ;;  %s229_s12 = int_to_ptr.vmem [resolvable:$true] %s228_s12 }
  0x22   : > { %193 = vperm.xlu0 %395, %v182_v1   ;;  %v187_v6 = vld [vmem:[%s158_s16 + $0x20] sm:$0xff]  ;;  %v188_v8 = vld [vmem:[%s158_s16 + $0x28] sm:$0xff]  ;;  %v189_v12 = vld [vmem:[%s158_s16 + $0x30] sm:$0xff]  ;;  %s230_s28 = sshll.u32 %s226_s26, 4  ;;  %s213_s29 = scalar_lea.sflag [#allocation4], %s600_s7  ;;  %s231_s28 = int_to_ptr.hbm [resolvable:$true] %s230_s28 }
  0x23   : > { %v190_v14 = vld [vmem:[%s158_s16 + $0x38] sm:$0xff]  ;;  %s440_s30 = sshra.s32 %s231_s28, 4  ;;  %s446_s6 = scalar_lea.hbm %s651_s2, 128  ;;  %s441_s30 = int_to_ptr.hbm [resolvable:$true] %s440_s30 }
  0x24   : > { %s442_s3 = scalar_lea.hbm %s441_s30, 64  ;;  %p447_p7 = scmp.lt.s32.totalorder %s441_s30, %s651_s2 }
  0x25   : > { %p443_p4 = scmp.ne.s32.totalorder %s441_s30, %s442_s3  ;;  %p448_p8 = scmp.lt.s32.totalorder %s446_s6, %s442_s3 }
  0x27   : > { %p444_p5 = pnand %p443_p4, %p577_p9  ;;  %p449_p10 = por %p448_p8, %p447_p7 }
  0x29   : > { %p445_p6 = pneg %p444_p5 }
  0x2b   : > { %p450_p13 = pnand %p449_p10, %p445_p6 }
  0x94   : > { %v194_v7 = vpop.permute.xlu0 %193 }
  0x95   : > { %v196_v9 = vmul.f32 %v194_v7, %v183_v2  ;;  %v197_v10 = vmul.f32 %v194_v7, %v184_v3  ;;  %v198_v11 = vmul.f32 %v194_v7, %v185_v4  ;;  %v199_v13 = vmul.f32 %v194_v7, %v186_v5 }
  0x96   : > { %v200_v15 = vmul.f32 %v194_v7, %v187_v6  ;;  %v201_v16 = vmul.f32 %v194_v7, %v188_v8  ;;  %v202_v17 = vmul.f32 %v194_v7, %v189_v12  ;;  %v203_v18 = vmul.f32 %v194_v7, %v190_v14 }
  0x97   : > { %204 = vst [vmem:[%s179_s27] sm:$0xff] %v196_v9 }
  0x98   : > { %205 = vst [vmem:[%s179_s27 + $0x8] sm:$0xff] %v197_v10 }
  0x99   : > { %206 = vst [vmem:[%s179_s27 + $0x10] sm:$0xff] %v198_v11 }
  0x9a   : > { %207 = vst [vmem:[%s179_s27 + $0x18] sm:$0xff] %v199_v13 }
  0x9b   : > { %208 = vst [vmem:[%s179_s27 + $0x20] sm:$0xff] %v200_v15 }
  0x9c   : > { %209 = vst [vmem:[%s179_s27 + $0x28] sm:$0xff] %v201_v16 }
  0x9d   : > { %210 = vst [vmem:[%s179_s27 + $0x30] sm:$0xff] %v202_v17 }
  0x9e   : > { %211 = vst [vmem:[%s179_s27 + $0x38] sm:$0xff] %v203_v18 }
  0x9f   : > { %453 = shalt.err (!%p450_p13)
}
  0xa0   : > { %334 = dma.vmem_to_hbm [thread:$0]  (%p577_p9), %s229_s12, 1024, %s231_s28, %s213_s29  }
  0xa1 PF: > { %s242_s7 = sand.u32 1, %s488_s9   ;;  %p341_p0 = pnand %p318_p12, %p584_p11 }
  0xa2   : > { %s243_s16 = scalar_lea.sflag [#allocation4], %s242_s7 }
  0xa3   : > { %p342_p1 = pneg %p341_p0 }
  0xa5   : > { %483 = dma.done.wait (%p342_p1), %s243_s16, 1024  }
  0xa6   : > { %485 = vsyncadd (%p342_p1), %s243_s16, 4294966272  ;;  %s18_s14 = sadd.s32 1, %s508_s14   ;;  %s656_s9 = smov %s492_s10 }
  0xa7   : > { %p15_p2 = scmp.ge.s32.totalorder %s18_s14, 4   ;;  %s657_s10 = smov %s496_s11 }
  0xa8   : > { %s658_s11 = smov %s582_s23  ;;  %s659_s12 = smov %s504_s13 }
  0xa9   : > { %s660_s13 = smov %s662_s17  ;;  %17 = sbr.rel (!%p15_p2) target bundleno = 6 (0x6), region = 73 }
  0xae   :  { %249 = vsyncpa [#allocation3], 1 }
  0xaf   :  { %251 = vsyncpa [#allocation3 + $0x1], 1 }
  0xb0   :  { %252 = vsyncpa [#allocation4], 1 }
  0xb1   :  { %254 = vsyncpa [#allocation4 + $0x1], 1 }

</bundles_post_ra>
